<compile_context>
chip_gen: v7x
topology: tpu7x:2x2x1
jax: 0.10.0
libtpu: 0.0.40
codegen_flags: <defaults>
</compile_context>

<pallas_src>
import jax
import jax.numpy as jnp
from jax.experimental import pallas as pl
from jax.experimental.pallas import tpu as pltpu


_NEG_BIG = -1e30  # finite "-inf" for padded logit lanes (python float, not traced)


# ---------------------------------------------------------------------------
# helpers
# ---------------------------------------------------------------------------
def _round_up(x: int, m: int) -> int:
    return ((x + m - 1) // m) * m


def _vmem_capacity_bytes() -> int:
    """Per-core VMEM capacity; conservative (v7x) fallback if query fails."""
    try:
        return int(pltpu.get_tpu_info().vmem_capacity_bytes)
    except Exception:  # pragma: no cover - interpret mode / old jax
        return 64 * 1024 * 1024


def _default_batch_tile() -> int:
    # Large tiles amortize the ~0.35us/grid-step overhead and the f32 epilogue;
    # 512 works across v5e/v6e/v7x and is capped by the VMEM budget below.
    return 512


def _select_batch_tile(B: int, tb_max: int) -> int:
    """Batch tile: multiple of 16 (bf16 sublane pack), >=2 grid steps when B allows."""
    tb = max(16, min(tb_max, _round_up(B, 16)))
    # Prefer >=2 grid steps so dimension_semantics=("parallel",) can shard the
    # batch axis across both v7x TensorCores; harmless serial split elsewhere.
    if B > 32 and _round_up(B, tb) // tb < 2:
        tb = max(16, _round_up((B + 1) // 2, 16))
    return tb


# ---------------------------------------------------------------------------
# kernel (one (TB, D_pad) batch tile; weights/biases VMEM-resident)
# ---------------------------------------------------------------------------
def _ffnn_kernel(x_ref, w1_ref, b1_ref, w2_ref, b2_ref, o_ref):
    # ---- hidden layer: Linear + ReLU (bf16 MXU matmul, f32 accumulate) -----
    x = x_ref[...]                                            # [TB, D_pad] bf16
    h = jnp.dot(x, w1_ref[...], preferred_element_type=jnp.float32)
    h = jnp.maximum(h + b1_ref[...], 0.0)                     # f32 epilogue

    # ---- output layer: Linear ----------------------------------------------
    logits = jnp.dot(h.astype(w2_ref.dtype), w2_ref[...],
                     preferred_element_type=jnp.float32)
    logits = logits + b2_ref[...]                             # [TB, O_pad] f32
    # Padded lanes carry b2 = -1e30 (padded W2 columns are zero), so they
    # vanish in the softmax below -- no in-kernel masking needed.

    # ---- numerically stable LogSoftmax --------------------------------------
    m = jnp.max(logits, axis=-1, keepdims=True)
    shifted = logits - m
    lse = jnp.log(jnp.sum(jnp.exp(shifted), axis=-1, keepdims=True))
    o_ref[...] = (shifted - lse).astype(o_ref.dtype)


# ---------------------------------------------------------------------------
# one-time parameter preparation (pad + cast, hoisted out of the forward call)
# ---------------------------------------------------------------------------
def prepare_ffnn_params(w1, b1, w2, b2, matmul_dtype=jnp.bfloat16):
    """Pad weights/biases to lane-dense (multiples of 128) shapes once.

    Invariant relied on by the kernel: padded W1/W2 entries are exactly zero
    and padded b2 lanes are -1e30 so padded logits drop out of the softmax.
    """
    D, H = w1.shape
    O = w2.shape[1]
    D_pad, H_pad, O_pad = (_round_up(v, 128) for v in (D, H, O))

    w1_p = jnp.pad(w1.astype(matmul_dtype), ((0, D_pad - D), (0, H_pad - H)))
    w2_p = jnp.pad(w2.astype(matmul_dtype), ((0, H_pad - H), (0, O_pad - O)))
    b1_p = jnp.pad(b1.astype(jnp.float32).reshape(1, H), ((0, 0), (0, H_pad - H)))
    b2_p = jnp.pad(b2.astype(jnp.float32).reshape(1, O), ((0, 0), (0, O_pad - O)),
                   constant_values=_NEG_BIG)

    return {
        "w1": w1_p, "b1": b1_p, "w2": w2_p, "b2": b2_p,
        "D": D, "H": H, "O": O,
        "D_pad": D_pad, "H_pad": H_pad, "O_pad": O_pad,
        "dtype": matmul_dtype,
    }


# ---------------------------------------------------------------------------
# forward
# ---------------------------------------------------------------------------
def ffnn_forward(x, params, *, tb=None):
    """log_softmax(relu(x @ W1 + b1) @ W2 + b2), x: [B, D] f32 -> [B, O] f32."""
    B, D = x.shape
    assert D == params["D"], f"expected input dim {params['D']}, got {D}"

    D_pad, H_pad, O_pad = params["D_pad"], params["H_pad"], params["O_pad"]
    O = params["O"]
    mdtype = params["dtype"]
    mbytes = jnp.dtype(mdtype).itemsize

    # Resident weight/bias footprint (single copy).
    resident_bytes = (D_pad * H_pad + H_pad * O_pad) * mbytes + (H_pad + O_pad) * 4

    def vmem_est(tb_, weight_buffers):
        return (weight_buffers * resident_bytes
                + 2 * tb_ * D_pad * mbytes      # x double-buffer
                + 2 * tb_ * O_pad * 4           # out double-buffer
                + 3 * tb_ * H_pad * 4           # h (f32) + bf16 cast + slack
                + 2 * tb_ * O_pad * 4)          # logits / softmax temporaries

    usable_vmem = max(32 * 1024 * 1024, int(_vmem_capacity_bytes() * 0.85))

    # --- batch tile selection -------------------------------------------------
    if tb is None:
        tb = _default_batch_tile()
    TB = _select_batch_tile(B, tb)
    # Cap TB so even the conservative (double-buffered weight) layout fits VMEM.
    while TB > 16 and vmem_est(TB, 2) > usable_vmem:
        TB = max(16, _round_up(TB // 2, 16))
    B_pad = _round_up(B, TB)
    # TODO(synk): add an H-tiled (grid reduction over H_pad) fallback with an
    # f32 logits accumulator for layers whose resident weights alone exceed the
    # per-core VMEM budget (relevant on v7x's 64 MiB TensorCores).

    # Pad x directly in the matmul dtype (no f32 padded copy).
    x_p = jnp.pad(x.astype(mdtype), ((0, B_pad - B), (0, D_pad - D)))

    def make_weight_spec(shape, single_buffer):
        idx = lambda i: (0, 0)
        if single_buffer and hasattr(pl, "Buffered"):
            try:
                return pl.BlockSpec(shape, idx, pipeline_mode=pl.Buffered(1))
            except TypeError:  # older BlockSpec without pipeline_mode
                pass
        return pl.BlockSpec(shape, idx)

    def run(single_buffer_weights):
        weight_buffers = 1 if single_buffer_weights else 2
        vmem_limit = int(min(max(int(1.25 * vmem_est(TB, weight_buffers)),
                                 32 * 1024 * 1024),
                             usable_vmem))
        in_specs = [
            pl.BlockSpec((TB, D_pad), lambda i: (i, 0)),                 # x: streamed
            make_weight_spec((D_pad, H_pad), single_buffer_weights),    # W1: resident
            make_weight_spec((1, H_pad), single_buffer_weights),        # b1: resident
            make_weight_spec((H_pad, O_pad), single_buffer_weights),    # W2: resident
            make_weight_spec((1, O_pad), single_buffer_weights),        # b2: resident
        ]
        return pl.pallas_call(
            _ffnn_kernel,
            out_shape=jax.ShapeDtypeStruct((B_pad, O_pad), jnp.float32),
            grid_spec=pltpu.PrefetchScalarGridSpec(
                num_scalar_prefetch=0,
                grid=(B_pad // TB,),
                in_specs=in_specs,
                out_specs=pl.BlockSpec((TB, O_pad), lambda i: (i, 0)),
            ),
            compiler_params=pltpu.CompilerParams(
                dimension_semantics=("parallel",),   # megacore sharding on v7x
                vmem_limit_bytes=vmem_limit,
            ),
        )(x_p, params["w1"], params["b1"], params["w2"], params["b2"])

    try:
        out_padded = run(True)            # single-buffered resident weights
    except Exception:
        out_padded = run(False)           # fallback: default double buffering

    # Drop batch/lane padding.
    return out_padded[:B, :O]


# ---------------------------------------------------------------------------
# reference (same bf16-matmul / f32-epilogue numerics as the kernel)
# ---------------------------------------------------------------------------
def ffnn_reference(x, w1, b1, w2, b2, matmul_dtype=jnp.bfloat16):
    h = jnp.dot(x.astype(matmul_dtype), w1.astype(matmul_dtype),
                preferred_element_type=jnp.float32)
    h = jnp.maximum(h + b1, 0.0)
    logits = jnp.dot(h.astype(matmul_dtype), w2.astype(matmul_dtype),
                     preferred_element_type=jnp.float32)
    logits = logits + b2
    return jax.nn.log_softmax(logits, axis=-1)


def init_params(key, input_dim, h, output_dim=5):
    # Deterministic init mimicking torch.nn.Linear's uniform(-1/sqrt(fan_in), ...)
    k1, k2, k3, k4 = jax.random.split(key, 4)
    bound1 = 1.0 / jnp.sqrt(input_dim)
    bound2 = 1.0 / jnp.sqrt(h)
    w1 = jax.random.uniform(k1, (input_dim, h), jnp.float32, -bound1, bound1)
    b1 = jax.random.uniform(k2, (1, h), jnp.float32, -bound1, bound1)
    w2 = jax.random.uniform(k3, (h, output_dim), jnp.float32, -bound2, bound2)
    b2 = jax.random.uniform(k4, (1, output_dim), jnp.float32, -bound2, bound2)
    return w1, b1, w2, b2


if __name__ == "__main__":
    key = jax.random.PRNGKey(0)
    kx, kp = jax.random.split(key)

    batch, input_dim, hidden = 8, 32, 32
    x = jax.random.normal(kx, (batch, input_dim), jnp.float32)
    w1, b1, w2, b2 = init_params(kp, input_dim, hidden)

    params = prepare_ffnn_params(w1, b1, w2, b2)   # one-time pad/cast
    out = ffnn_forward(x, params)
    out = jax.block_until_ready(out)

    ref = ffnn_reference(x, w1, b1, w2, b2)
    assert out.shape == (batch, 5), f"bad shape {out.shape}"
    assert bool(jnp.all(jnp.isfinite(out))), "non-finite output"
    assert jnp.allclose(out, ref, atol=1e-4, rtol=1e-4), "mismatch vs reference"

    print("KERNEL_OK")
</pallas_src>

<mosaic_0001>
module attributes {stable_mosaic.version = 11 : i64} {
  func.func @_ffnn_kernel(%arg0: i32, %arg1: memref<16x128xbf16, #tpu.memory_space<vmem>>, %arg2: memref<128x128xbf16, #tpu.memory_space<vmem>>, %arg3: memref<1x128xf32, #tpu.memory_space<vmem>>, %arg4: memref<128x128xbf16, #tpu.memory_space<vmem>>, %arg5: memref<1x128xf32, #tpu.memory_space<vmem>>, %arg6: memref<16x128xf32, #tpu.memory_space<vmem>>) attributes {dimension_semantics = [#tpu.dimension_semantics<parallel>], iteration_bounds = array<i64: 1>, scalar_prefetch = 0 : i64, scratch_operands = 0 : i64, tpu.core_type = #tpu.core_type<tc>, window_params = [{transform_indices = @transform_0, window_bounds = array<i64: 16, 128>}, {pipeline_mode = #tpu.pipeline_mode<synchronous>, transform_indices = @transform_1, window_bounds = array<i64: 128, 128>}, {pipeline_mode = #tpu.pipeline_mode<synchronous>, transform_indices = @transform_2, window_bounds = array<i64: 1, 128>}, {pipeline_mode = #tpu.pipeline_mode<synchronous>, transform_indices = @transform_3, window_bounds = array<i64: 128, 128>}, {pipeline_mode = #tpu.pipeline_mode<synchronous>, transform_indices = @transform_4, window_bounds = array<i64: 1, 128>}, {transform_indices = @transform_5, window_bounds = array<i64: 16, 128>}]} {
    %c0 = arith.constant 0 : index
    %c0_0 = arith.constant 0 : index
    %0 = vector.load %arg1[%c0, %c0_0] : memref<16x128xbf16, #tpu.memory_space<vmem>>, vector<16x128xbf16>
    %c0_1 = arith.constant 0 : index
    %c0_2 = arith.constant 0 : index
    %1 = vector.load %arg2[%c0_1, %c0_2] : memref<128x128xbf16, #tpu.memory_space<vmem>>, vector<128x128xbf16>
    %cst = arith.constant dense<0.000000e+00> : vector<16x128xf32>
    %2 = tpu.matmul %0, %1, %cst {dimension_numbers = #tpu.dot_dimension_numbers<[1], [0], [0], [1], [0, 0, 1, 1], [], []>} : vector<16x128xbf16>, vector<128x128xbf16>, vector<16x128xf32> -> vector<16x128xf32>
    %c0_3 = arith.constant 0 : index
    %c0_4 = arith.constant 0 : index
    %3 = vector.load %arg3[%c0_3, %c0_4] : memref<1x128xf32, #tpu.memory_space<vmem>>, vector<1x128xf32>
    %4 = vector.broadcast %3 : vector<1x128xf32> to vector<16x128xf32>
    %5 = arith.addf %2, %4 : vector<16x128xf32>
    %cst_5 = arith.constant 0.000000e+00 : f32
    %6 = vector.broadcast %cst_5 : f32 to vector<16x128xf32>
    %7 = arith.maximumf %5, %6 : vector<16x128xf32>
    %8 = arith.truncf %7 : vector<16x128xf32> to vector<16x128xbf16>
    %c0_6 = arith.constant 0 : index
    %c0_7 = arith.constant 0 : index
    %9 = vector.load %arg4[%c0_6, %c0_7] : memref<128x128xbf16, #tpu.memory_space<vmem>>, vector<128x128xbf16>
    %cst_8 = arith.constant dense<0.000000e+00> : vector<16x128xf32>
    %10 = tpu.matmul %8, %9, %cst_8 {dimension_numbers = #tpu.dot_dimension_numbers<[1], [0], [0], [1], [0, 0, 1, 1], [], []>} : vector<16x128xbf16>, vector<128x128xbf16>, vector<16x128xf32> -> vector<16x128xf32>
    %c0_9 = arith.constant 0 : index
    %c0_10 = arith.constant 0 : index
    %11 = vector.load %arg5[%c0_9, %c0_10] : memref<1x128xf32, #tpu.memory_space<vmem>>, vector<1x128xf32>
    %12 = vector.broadcast %11 : vector<1x128xf32> to vector<16x128xf32>
    %13 = arith.addf %10, %12 : vector<16x128xf32>
    %cst_11 = arith.constant dense<0xFF800000> : vector<16xf32>
    %14 = vector.multi_reduction <maximumf>, %13, %cst_11 [1] : vector<16x128xf32> to vector<16xf32>
    %15 = vector.shape_cast %14 : vector<16xf32> to vector<16x1xf32>
    %16 = vector.broadcast %15 : vector<16x1xf32> to vector<16x128xf32>
    %17 = arith.subf %13, %16 : vector<16x128xf32>
    %18 = math.exp %17 : vector<16x128xf32>
    %cst_12 = arith.constant dense<0.000000e+00> : vector<16xf32>
    %19 = vector.multi_reduction <add>, %18, %cst_12 [1] : vector<16x128xf32> to vector<16xf32>
    %20 = vector.shape_cast %19 : vector<16xf32> to vector<16x1xf32>
    %21 = math.log %20 : vector<16x1xf32>
    %22 = vector.broadcast %21 : vector<16x1xf32> to vector<16x128xf32>
    %23 = arith.subf %17, %22 : vector<16x128xf32>
    %c0_13 = arith.constant 0 : index
    %c0_14 = arith.constant 0 : index
    %24 = vector.load %arg6[%c0_13, %c0_14] : memref<16x128xf32, #tpu.memory_space<vmem>>, vector<16x128xf32>
    tpu.vector_store %arg6[%c0_13, %c0_14], %23 {strides = array<i32>} : memref<16x128xf32, #tpu.memory_space<vmem>>, vector<16x128xf32>,
    return
  }
  func.func @transform_0(%arg0: i32) -> (i32, i32) {
    %c0_i32 = arith.constant 0 : i32
    %c0_i32_0 = arith.constant 0 : i32
    return %arg0, %c0_i32 : i32, i32
  }
  func.func @transform_1(%arg0: i32) -> (i32, i32) {
    %c0_i32 = arith.constant 0 : i32
    %c0_i32_0 = arith.constant 0 : i32
    %c0_i32_1 = arith.constant 0 : i32
    return %c0_i32, %c0_i32_0 : i32, i32
  }
  func.func @transform_2(%arg0: i32) -> (i32, i32) {
    %c0_i32 = arith.constant 0 : i32
    %c0_i32_0 = arith.constant 0 : i32
    %c0_i32_1 = arith.constant 0 : i32
    return %c0_i32, %c0_i32_0 : i32, i32
  }
  func.func @transform_3(%arg0: i32) -> (i32, i32) {
    %c0_i32 = arith.constant 0 : i32
    %c0_i32_0 = arith.constant 0 : i32
    %c0_i32_1 = arith.constant 0 : i32
    return %c0_i32, %c0_i32_0 : i32, i32
  }
  func.func @transform_4(%arg0: i32) -> (i32, i32) {
    %c0_i32 = arith.constant 0 : i32
    %c0_i32_0 = arith.constant 0 : i32
    %c0_i32_1 = arith.constant 0 : i32
    return %c0_i32, %c0_i32_0 : i32, i32
  }
  func.func @transform_5(%arg0: i32) -> (i32, i32) {
    %c0_i32 = arith.constant 0 : i32
    %c0_i32_0 = arith.constant 0 : i32
    return %arg0, %c0_i32 : i32, i32
  }
}

module attributes {stable_mosaic.version = 11 : i64} {
  func.func @_ffnn_kernel(%arg0: i32, %arg1: memref<16x128xbf16, #tpu.memory_space<vmem>>, %arg2: memref<128x128xbf16, #tpu.memory_space<vmem>>, %arg3: memref<1x128xf32, #tpu.memory_space<vmem>>, %arg4: memref<128x128xbf16, #tpu.memory_space<vmem>>, %arg5: memref<1x128xf32, #tpu.memory_space<vmem>>, %arg6: memref<16x128xf32, #tpu.memory_space<vmem>>) attributes {dimension_semantics = [#tpu.dimension_semantics<parallel>], iteration_bounds = array<i64: 1>, scalar_prefetch = 0 : i64, scratch_operands = 0 : i64, tpu.core_type = #tpu.core_type<tc>, window_params = [{transform_indices = @transform_0, window_bounds = array<i64: 16, 128>}, {pipeline_mode = #tpu.pipeline_mode<synchronous>, transform_indices = @transform_1, window_bounds = array<i64: 128, 128>}, {pipeline_mode = #tpu.pipeline_mode<synchronous>, transform_indices = @transform_2, window_bounds = array<i64: 1, 128>}, {pipeline_mode = #tpu.pipeline_mode<synchronous>, transform_indices = @transform_3, window_bounds = array<i64: 128, 128>}, {pipeline_mode = #tpu.pipeline_mode<synchronous>, transform_indices = @transform_4, window_bounds = array<i64: 1, 128>}, {transform_indices = @transform_5, window_bounds = array<i64: 16, 128>}]} {
    %c0 = arith.constant 0 : index
    %c0_0 = arith.constant 0 : index
    %0 = vector.load %arg1[%c0, %c0_0] : memref<16x128xbf16, #tpu.memory_space<vmem>>, vector<16x128xbf16>
    %c0_1 = arith.constant 0 : index
    %c0_2 = arith.constant 0 : index
    %1 = vector.load %arg2[%c0_1, %c0_2] : memref<128x128xbf16, #tpu.memory_space<vmem>>, vector<128x128xbf16>
    %cst = arith.constant dense<0.000000e+00> : vector<16x128xf32>
    %2 = tpu.matmul %0, %1, %cst {dimension_numbers = #tpu.dot_dimension_numbers<[1], [0], [0], [1], [0, 0, 1, 1], [], []>} : vector<16x128xbf16>, vector<128x128xbf16>, vector<16x128xf32> -> vector<16x128xf32>
    %c0_3 = arith.constant 0 : index
    %c0_4 = arith.constant 0 : index
    %3 = vector.load %arg3[%c0_3, %c0_4] : memref<1x128xf32, #tpu.memory_space<vmem>>, vector<1x128xf32>
    %4 = vector.broadcast %3 : vector<1x128xf32> to vector<16x128xf32>
    %5 = arith.addf %2, %4 : vector<16x128xf32>
    %cst_5 = arith.constant 0.000000e+00 : f32
    %6 = vector.broadcast %cst_5 : f32 to vector<16x128xf32>
    %7 = arith.maximumf %5, %6 : vector<16x128xf32>
    %8 = arith.truncf %7 : vector<16x128xf32> to vector<16x128xbf16>
    %c0_6 = arith.constant 0 : index
    %c0_7 = arith.constant 0 : index
    %9 = vector.load %arg4[%c0_6, %c0_7] : memref<128x128xbf16, #tpu.memory_space<vmem>>, vector<128x128xbf16>
    %cst_8 = arith.constant dense<0.000000e+00> : vector<16x128xf32>
    %10 = tpu.matmul %8, %9, %cst_8 {dimension_numbers = #tpu.dot_dimension_numbers<[1], [0], [0], [1], [0, 0, 1, 1], [], []>} : vector<16x128xbf16>, vector<128x128xbf16>, vector<16x128xf32> -> vector<16x128xf32>
    %c0_9 = arith.constant 0 : index
    %c0_10 = arith.constant 0 : index
    %11 = vector.load %arg5[%c0_9, %c0_10] : memref<1x128xf32, #tpu.memory_space<vmem>>, vector<1x128xf32>
    %12 = vector.broadcast %11 : vector<1x128xf32> to vector<16x128xf32>
    %13 = arith.addf %10, %12 : vector<16x128xf32>
    %cst_11 = arith.constant dense<0xFF800000> : vector<16xf32>
    %14 = vector.multi_reduction <maximumf>, %13, %cst_11 [1] : vector<16x128xf32> to vector<16xf32>
    %15 = vector.shape_cast %14 : vector<16xf32> to vector<16x1xf32>
    %16 = vector.broadcast %15 : vector<16x1xf32> to vector<16x128xf32>
    %17 = arith.subf %13, %16 : vector<16x128xf32>
    %18 = math.exp %17 : vector<16x128xf32>
    %cst_12 = arith.constant dense<0.000000e+00> : vector<16xf32>
    %19 = vector.multi_reduction <add>, %18, %cst_12 [1] : vector<16x128xf32> to vector<16xf32>
    %20 = vector.shape_cast %19 : vector<16xf32> to vector<16x1xf32>
    %21 = math.log %20 : vector<16x1xf32>
    %22 = vector.broadcast %21 : vector<16x1xf32> to vector<16x128xf32>
    %23 = arith.subf %17, %22 : vector<16x128xf32>
    %c0_13 = arith.constant 0 : index
    %c0_14 = arith.constant 0 : index
    %24 = vector.load %arg6[%c0_13, %c0_14] : memref<16x128xf32, #tpu.memory_space<vmem>>, vector<16x128xf32>
    tpu.vector_store %arg6[%c0_13, %c0_14], %23 {strides = array<i32>} : memref<16x128xf32, #tpu.memory_space<vmem>>, vector<16x128xf32>,
    return
  }
  func.func @transform_0(%arg0: i32) -> (i32, i32) {
    %c0_i32 = arith.constant 0 : i32
    %c0_i32_0 = arith.constant 0 : i32
    return %arg0, %c0_i32 : i32, i32
  }
  func.func @transform_1(%arg0: i32) -> (i32, i32) {
    %c0_i32 = arith.constant 0 : i32
    %c0_i32_0 = arith.constant 0 : i32
    %c0_i32_1 = arith.constant 0 : i32
    return %c0_i32, %c0_i32_0 : i32, i32
  }
  func.func @transform_2(%arg0: i32) -> (i32, i32) {
    %c0_i32 = arith.constant 0 : i32
    %c0_i32_0 = arith.constant 0 : i32
    %c0_i32_1 = arith.constant 0 : i32
    return %c0_i32, %c0_i32_0 : i32, i32
  }
  func.func @transform_3(%arg0: i32) -> (i32, i32) {
    %c0_i32 = arith.constant 0 : i32
    %c0_i32_0 = arith.constant 0 : i32
    %c0_i32_1 = arith.constant 0 : i32
    return %c0_i32, %c0_i32_0 : i32, i32
  }
  func.func @transform_4(%arg0: i32) -> (i32, i32) {
    %c0_i32 = arith.constant 0 : i32
    %c0_i32_0 = arith.constant 0 : i32
    %c0_i32_1 = arith.constant 0 : i32
    return %c0_i32, %c0_i32_0 : i32, i32
  }
  func.func @transform_5(%arg0: i32) -> (i32, i32) {
    %c0_i32 = arith.constant 0 : i32
    %c0_i32_0 = arith.constant 0 : i32
    return %arg0, %c0_i32 : i32, i32
  }
}

</mosaic_0001>

<bundles_post_ra>
// kernel: tpu_custom_call.1
= control target key start
LH: loop header
LB: loop body
LE: loop exit
PB: predicated region body
PF: predicated region fallthrough
CT: control target
= control target key end

     0   :  { %10 = vsyncpa [#allocation3], 0  ;;  %s654_s0 = inlined_call_operand.hbm [shape: bf16[16,128], index: 0, kind: input, shape index: {}]   ;;  %s655_s1 = inlined_call_operand.hbm [shape: bf16[128,128], index: 1, kind: input, shape index: {}]   ;;  %s656_s2 = inlined_call_operand.vmem [shape: f32[1,128], index: 2, kind: input, shape index: {}]   ;;  %s657_s3 = inlined_call_operand.hbm [shape: bf16[128,128], index: 3, kind: input, shape index: {}]   ;;  %s658_s4 = inlined_call_operand.vmem [shape: f32[1,128], index: 4, kind: input, shape index: {}]   ;;  %s659_s5 = inlined_call_operand.hbm [shape: f32[16,128], index: 5, kind: output, shape index: {}]  }
   0x1   :  { %11 = vsyncpa [#allocation6], 0 }
   0x2   :  { %12 = vsyncpa [#allocation4], 0  ;;  %s544_s18 = smov [#allocation5]   ;;  %s545_s20 = smov [#allocation2]  }
   0x3   :  { %s30_s19 = sshll.u32 %s544_s18, 4  ;;  %s18_s21 = sshll.u32 %s545_s20, 4  ;;  %s31_s19 = int_to_ptr.vmem [resolvable:$true] %s30_s19  ;;  %s584_s21 = int_to_ptr.vmem [resolvable:$true] %s18_s21 }
   0x4   :  { %s450_s24 = scalar_lea.hbm %s655_s1, 1024 }
   0x5   :  { %p451_p0 = scmp.ne.s32.totalorder %s655_s1, %s450_s24  ;;  %p454_p1 = scmp.lt.u32.totalorder %s450_s24, %s655_s1 }
   0x7   :  { %p456_p2 = pnand %p454_p1, %p451_p0 }
   0x9   :  { %459 = shalt.err (!%p456_p2)
}
   0xa   :  { %s460_s29 = scalar_lea.vmem %s31_s19, 1024  ;;  %p465_p4 = scmp.lt.s32.totalorder %s31_s19, %s31_s19 }
   0xb   :  { %p461_p3 = scmp.ne.s32.totalorder %s31_s19, %s460_s29  ;;  %p466_p5 = scmp.lt.s32.totalorder %s460_s29, %s460_s29 }
   0xd   :  { %p467_p6 = por %p466_p5, %p465_p4 }
   0xf   :  { %p468_p7 = pnand %p467_p6, %p461_p3 }
  0x11   :  { %471 = shalt.err (!%p468_p7)
}
  0x12   :  { %s546_s30 = smov 64   ;;  %s547_s6 = smov 4  }
  0x13   :  { %36 = dma.hbm_to_vmem [thread:$0]  %s655_s1, 1024, %s31_s19, [#allocation6], %s546_s30, %s546_s30, %s547_s6  }
  0x14   :  { %s472_s11 = scalar_lea.hbm %s654_s0, 128 }
  0x15   :  { %p473_p8 = scmp.ne.s32.totalorder %s654_s0, %s472_s11  ;;  %p476_p9 = scmp.lt.u32.totalorder %s472_s11, %s654_s0 }
  0x17   :  { %p478_p10 = pnand %p476_p9, %p473_p8 }
  0x19   :  { %481 = shalt.err (!%p478_p10)
}
  0x1a   :  { %s482_s16 = scalar_lea.vmem %s584_s21, 128  ;;  %p487_p12 = scmp.lt.s32.totalorder %s584_s21, %s584_s21 }
  0x1b   :  { %p483_p11 = scmp.ne.s32.totalorder %s584_s21, %s482_s16  ;;  %p488_p13 = scmp.lt.s32.totalorder %s482_s16, %s482_s16 }
  0x1d   :  { %p489_p0 = por %p488_p13, %p487_p12 }
  0x1f   :  { %p490_p1 = pnand %p489_p0, %p483_p11 }
  0x21   :  { %493 = shalt.err (!%p490_p1)
}
  0x22   :  { %24 = dma.hbm_to_vmem [thread:$0]  %s654_s0, 128, %s584_s21, [#allocation3], %s546_s30, %s546_s30, %s547_s6  }
  0x23   :  { %s548_s18 = smov [#allocation7]   ;;  %s494_s23 = scalar_lea.hbm %s657_s3, 1024 }
  0x24   :  { %s44_s19 = sshll.u32 %s548_s18, 4  ;;  %p495_p2 = scmp.ne.s32.totalorder %s657_s3, %s494_s23  ;;  %s45_s19 = int_to_ptr.vmem [resolvable:$true] %s44_s19 }
  0x25   :  { %p498_p3 = scmp.lt.u32.totalorder %s494_s23, %s657_s3 }
  0x27   :  { %p500_p4 = pnand %p498_p3, %p495_p2 }
  0x29   :  { %503 = shalt.err (!%p500_p4)
}
  0x2a   :  { %s504_s28 = scalar_lea.vmem %s45_s19, 1024  ;;  %p509_p6 = scmp.lt.s32.totalorder %s45_s19, %s45_s19 }
  0x2b   :  { %p505_p5 = scmp.ne.s32.totalorder %s45_s19, %s504_s28  ;;  %p510_p7 = scmp.lt.s32.totalorder %s504_s28, %s504_s28 }
  0x2d   :  { %p511_p8 = por %p510_p7, %p509_p6 }
  0x2f   :  { %p512_p9 = pnand %p511_p8, %p505_p5 }
  0x31   :  { %515 = shalt.err (!%p512_p9)
}
  0x32   :  { %50 = dma.hbm_to_vmem [thread:$0]  %s657_s3, 1024, %s45_s19, [#allocation6], %s546_s30, %s546_s30, %s547_s6  }
  0x33   :  { %538 = dma.done.wait [#allocation3], 128  }
  0x34   :  { %539 = vsyncadd [#allocation3], 4294967168 }
  0x35   :  { %540 = dma.done.wait [#allocation6], 2048  }
  0x36   :  { %541 = vsyncadd [#allocation6], 4294965248  ;;  %v549_v0 = vmov 0.0   ;;  %vm550_vm0 = vmmov 0   ;;  %v425_v1 = vld [vmem:[#allocation5] sm:$0xff]   ;;  %v426_v2 = vld [vmem:[#allocation5 + $0x8] sm:$0xff]  }
  0x37   :  { %375 = vmatprep.subr.bf16.mxu0 %v549_v0  ;;  %391 = vmatprep.mubr.msk.bf16.mxu0 %vm550_vm0, %v549_v0  ;;  %v427_v3 = vld [vmem:[#allocation5 + $0x10] sm:$0xff]   ;;  %v434_v4 = vld [vmem:[#allocation7] sm:$0xff]   ;;  %v428_v5 = vld [vmem:[#allocation5 + $0x18] sm:$0xff]  }
  0x38   :  { %395 = vmatprep.subr.bf16.mxu1 %v549_v0  ;;  %411 = vmatprep.mubr.msk.bf16.mxu1 %vm550_vm0, %v549_v0  ;;  %v435_v6 = vld [vmem:[#allocation7 + $0x8] sm:$0xff]   ;;  %v429_v7 = vld [vmem:[#allocation5 + $0x20] sm:$0xff]   ;;  %v436_v8 = vld [vmem:[#allocation7 + $0x10] sm:$0xff]  }
  0x39   :  { %376 = vmatpush3.bf16.msra.mxu0 %v425_v1  ;;  %396 = vmatpush3.bf16.msra.mxu1 %v434_v4  ;;  %v430_v9 = vld [vmem:[#allocation5 + $0x28] sm:$0xff]   ;;  %v437_v10 = vld [vmem:[#allocation7 + $0x18] sm:$0xff]   ;;  %v431_v11 = vld [vmem:[#allocation5 + $0x30] sm:$0xff]  }
  0x3a   :  { %377 = vmatprep.subr.bf16.mxu0 %v549_v0  ;;  %397 = vmatprep.subr.bf16.mxu1 %v549_v0  ;;  %v438_v12 = vld [vmem:[#allocation7 + $0x20] sm:$0xff]   ;;  %v432_v13 = vld [vmem:[#allocation5 + $0x38] sm:$0xff]   ;;  %v439_v14 = vld [vmem:[#allocation7 + $0x28] sm:$0xff]  }
  0x3b   :  { %v433_v15 = vld [vmem:[#allocation2] sm:$0xff]   ;;  %v440_v16 = vld [vmem:[#allocation7 + $0x30] sm:$0xff]  }
  0x3c   :  { %v441_v17 = vld [vmem:[#allocation7 + $0x38] sm:$0xff]  }
  0x3d   :  { %378 = vmatpush3.bf16.msra.mxu0 %v426_v2  ;;  %398 = vmatpush3.bf16.msra.mxu1 %v435_v6  ;;  %v338_v18 = vld [vmem:[%s656_s2] ss:$0 sm:$0xff]  ;;  %s551_s2 = smov [#allocation8]  }
  0x3e   :  { %379 = vmatprep.subr.bf16.mxu0 %v549_v0  ;;  %399 = vmatprep.subr.bf16.mxu1 %v549_v0  ;;  %v348_v28 = vld [vmem:[%s658_s4] ss:$0 sm:$0xff]  ;;  %s325_s4 = sshll.u32 %s551_s2, 4  ;;  %s326_s4 = int_to_ptr.vmem [resolvable:$true] %s325_s4 }
  0x3f   :  { %s516_s7 = scalar_lea.vmem %s326_s4, 256  ;;  %p521_p11 = scmp.lt.s32.totalorder %s326_s4, %s326_s4 }
  0x40   :  { %p517_p10 = scmp.ne.s32.totalorder %s326_s4, %s516_s7  ;;  %p522_p12 = scmp.lt.s32.totalorder %s516_s7, %s516_s7 }
  0x41   :  { %380 = vmatpush3.bf16.msra.mxu0 %v427_v3  ;;  %400 = vmatpush3.bf16.msra.mxu1 %v436_v8 }
  0x42   :  { %381 = vmatprep.subr.bf16.mxu0 %v549_v0  ;;  %401 = vmatprep.subr.bf16.mxu1 %v549_v0  ;;  %p523_p13 = por %p522_p12, %p521_p11 }
  0x44   :  { %p524_p0 = pnand %p523_p13, %p517_p10 }
  0x45   :  { %382 = vmatpush3.bf16.msra.mxu0 %v428_v5  ;;  %402 = vmatpush3.bf16.msra.mxu1 %v437_v10 }
  0x46   :  { %383 = vmatprep.subr.bf16.mxu0 %v549_v0  ;;  %403 = vmatprep.subr.bf16.mxu1 %v549_v0 }
  0x49   :  { %384 = vmatpush3.bf16.msra.mxu0 %v429_v7  ;;  %404 = vmatpush3.bf16.msra.mxu1 %v438_v12 }
  0x4a   :  { %385 = vmatprep.subr.bf16.mxu0 %v549_v0  ;;  %405 = vmatprep.subr.bf16.mxu1 %v549_v0 }
  0x4d   :  { %386 = vmatpush3.bf16.msra.mxu0 %v430_v9  ;;  %406 = vmatpush3.bf16.msra.mxu1 %v439_v14 }
  0x4e   :  { %387 = vmatprep.subr.bf16.mxu0 %v549_v0  ;;  %407 = vmatprep.subr.bf16.mxu1 %v549_v0 }
  0x51   :  { %388 = vmatpush3.bf16.msra.mxu0 %v431_v11  ;;  %408 = vmatpush3.bf16.msra.mxu1 %v440_v16 }
  0x52   :  { %389 = vmatprep.subr.bf16.mxu0 %v549_v0  ;;  %409 = vmatprep.subr.bf16.mxu1 %v549_v0 }
  0x55   :  { %390 = vmatpush3.bf16.msra.mxu0 %v432_v13  ;;  %410 = vmatpush3.bf16.msra.mxu1 %v441_v17 }
  0x58   :  { %392 = vmatmul.mubr.bf16.vlgmr.msra.gmra.mrb[0].mxu0 %v433_v15 }
 0x12b   :  { %v176_v19 = vpop.f32.mrb[0].mxu0 }
 0x12c   :  { %v177_v20 = vadd.f32 %v338_v18, %v176_v19  ;;  %v393_v21 = vpop.f32.mrb[1].mxu0 }
 0x12d   :  { %v179_v22 = vpop.f32.mrb[2].mxu0 }
 0x12e   :  { %v180_v23 = vadd.f32 %v338_v18, %v179_v22  ;;  %v394_v24 = vpop.f32.mrb[3].mxu0  ;;  %v183_v25 = vmax.f32 %v177_v20, 0.0 }
 0x130   :  { %v184_v26 = vmax.f32 %v180_v23, 0.0 }
 0x132   :  { %v185_v27 = vpack.c.bf16 %v184_v26, %v183_v25 }
 0x134   :  { %412 = vmatmul.mubr.bf16.vlgmr.msra.gmra.mrb[0].mxu1 %v185_v27 }
 0x207   :  { %v291_v29 = vpop.f32.mrb[0].mxu1 }
 0x208   :  { %v292_v30 = vadd.f32 %v348_v28, %v291_v29  ;;  %v413_v31 = vpop.f32.mrb[1].mxu1 }
 0x209   :  { %v294_v32 = vpop.f32.mrb[2].mxu1 }
 0x20a   :  { %298 = vmax.xlane.f32.xlu0 %v292_v30  ;;  %v414_v33 = vpop.f32.mrb[3].mxu1  ;;  %v295_v34 = vadd.f32 %v348_v28, %v294_v32 }
 0x20e   :  { %300 = vmax.xlane.f32.xlu0 %v295_v34 }
 0x297   :  { %v299_v35 = vpop.xlane.xlu0 %298 }
 0x298   :  { %v302_v36 = vsub.f32 %v292_v30, %v299_v35 }
 0x29a   :  { %v304_v37 = vmul.f32 1.442695, %v302_v36 }
 0x29b   :  { %v301_v38 = vpop.xlane.xlu0 %300 }
 0x29c   :  { %v303_v39 = vsub.f32 %v295_v34, %v301_v38  ;;  %442 = vpow2.f32 %v304_v37 }
 0x29e   :  { %v306_v40 = vmul.f32 1.442695, %v303_v39 }
 0x2a0   :  { %444 = vpow2.f32 %v306_v40 }
 0x2a6   :  { %v443_v41 = vpop.eup %442 }
 0x2a7   :  { %308 = vadd.xlane.f32.xlu1 %v443_v41 }
 0x2aa   :  { %v445_v42 = vpop.eup %444 }
 0x2ab   :  { %310 = vadd.xlane.f32.xlu1 %v445_v42 }
 0x334   :  { %v309_v43 = vpop.xlane.xlu1 %308 }
 0x335   :  { %446 = vlog2.f32 %v309_v43 }
 0x338   :  { %v311_v44 = vpop.xlane.xlu1 %310 }
 0x339   :  { %448 = vlog2.f32 %v311_v44 }
 0x33f   :  { %v447_v45 = vpop.eup %446 }
 0x340   :  { %v313_v46 = vmul.f32 0.6931472, %v447_v45 }
 0x342   :  { %v316_v47 = vsub.f32 %v302_v36, %v313_v46 }
 0x343   :  { %v449_v48 = vpop.eup %448 }
 0x344   :  { %318 = vst [vmem:[#allocation8] sm:$0xff] %v316_v47  ;;  %v315_v49 = vmul.f32 0.6931472, %v449_v48 }
 0x346   :  { %v317_v50 = vsub.f32 %v303_v39, %v315_v49 }
 0x348   :  { %319 = vst [vmem:[#allocation8 + $0x8] sm:$0xff] %v317_v50 }
 0x349   :  { %527 = shalt.err (!%p524_p0)
}
 0x34a   :  { %s528_s10 = scalar_lea.hbm %s659_s5, 256 }
 0x34b   :  { %p529_p1 = scmp.ne.s32.totalorder %s659_s5, %s528_s10  ;;  %p532_p2 = scmp.lt.u32.totalorder %s528_s10, %s659_s5 }
 0x34d   :  { %p534_p3 = pnand %p532_p2, %p529_p1 }
 0x34f   :  { %537 = shalt.err (!%p534_p3)
}
 0x350   :  { %s552_s15 = smov 128   ;;  %s553_s16 = smov 8  }
 0x351   :  { %331 = dma.vmem_to_hbm [thread:$0]  %s326_s4, 256, %s659_s5, [#allocation4], %s552_s15, %s552_s15, %s553_s16  }
 0x352   :  { %542 = dma.done.wait [#allocation4], 256  }
 0x353   :  { %543 = vsyncadd [#allocation4], 4294967040 }
 0x354   :  { %335 = vsyncpa [#allocation3], 1 }
 0x355   :  { %336 = vsyncpa [#allocation6], 1 }
 0x356   :  { %337 = vsyncpa [#allocation4], 1 }

// kernel: tpu_custom_call.1
= control target key start
LH: loop header
LB: loop body
LE: loop exit
PB: predicated region body
PF: predicated region fallthrough
CT: control target
= control target key end

     0   :  { %10 = vsyncpa [#allocation3], 0  ;;  %s654_s0 = inlined_call_operand.hbm [shape: bf16[16,128], index: 0, kind: input, shape index: {}]   ;;  %s655_s1 = inlined_call_operand.hbm [shape: bf16[128,128], index: 1, kind: input, shape index: {}]   ;;  %s656_s2 = inlined_call_operand.vmem [shape: f32[1,128], index: 2, kind: input, shape index: {}]   ;;  %s657_s3 = inlined_call_operand.hbm [shape: bf16[128,128], index: 3, kind: input, shape index: {}]   ;;  %s658_s4 = inlined_call_operand.vmem [shape: f32[1,128], index: 4, kind: input, shape index: {}]   ;;  %s659_s5 = inlined_call_operand.hbm [shape: f32[16,128], index: 5, kind: output, shape index: {}]  }
   0x1   :  { %11 = vsyncpa [#allocation6], 0 }
   0x2   :  { %12 = vsyncpa [#allocation4], 0  ;;  %s544_s18 = smov [#allocation5]   ;;  %s545_s20 = smov [#allocation2]  }
   0x3   :  { %s30_s19 = sshll.u32 %s544_s18, 4  ;;  %s18_s21 = sshll.u32 %s545_s20, 4  ;;  %s31_s19 = int_to_ptr.vmem [resolvable:$true] %s30_s19  ;;  %s584_s21 = int_to_ptr.vmem [resolvable:$true] %s18_s21 }
   0x4   :  { %s450_s24 = scalar_lea.hbm %s655_s1, 1024 }
   0x5   :  { %p451_p0 = scmp.ne.s32.totalorder %s655_s1, %s450_s24  ;;  %p454_p1 = scmp.lt.u32.totalorder %s450_s24, %s655_s1 }
   0x7   :  { %p456_p2 = pnand %p454_p1, %p451_p0 }
   0x9   :  { %459 = shalt.err (!%p456_p2)
}
   0xa   :  { %s460_s29 = scalar_lea.vmem %s31_s19, 1024  ;;  %p465_p4 = scmp.lt.s32.totalorder %s31_s19, %s31_s19 }
   0xb   :  { %p461_p3 = scmp.ne.s32.totalorder %s31_s19, %s460_s29  ;;  %p466_p5 = scmp.lt.s32.totalorder %s460_s29, %s460_s29 }
   0xd   :  { %p467_p6 = por %p466_p5, %p465_p4 }
   0xf   :  { %p468_p7 = pnand %p467_p6, %p461_p3 }
  0x11   :  { %471 = shalt.err (!%p468_p7)
}
  0x12   :  { %s546_s30 = smov 64   ;;  %s547_s6 = smov 4  }
  0x13   :  { %36 = dma.hbm_to_vmem [thread:$0]  %s655_s1, 1024, %s31_s19, [#allocation6], %s546_s30, %s546_s30, %s547_s6  }
  0x14   :  { %s472_s11 = scalar_lea.hbm %s654_s0, 128 }
  0x15   :  { %p473_p8 = scmp.ne.s32.totalorder %s654_s0, %s472_s11  ;;  %p476_p9 = scmp.lt.u32.totalorder %s472_s11, %s654_s0 }
  0x17   :  { %p478_p10 = pnand %p476_p9, %p473_p8 }
  0x19   :  { %481 = shalt.err (!%p478_p10)
}
  0x1a   :  { %s482_s16 = scalar_lea.vmem %s584_s21, 128  ;;  %p487_p12 = scmp.lt.s32.totalorder %s584_s21, %s584_s21 }
  0x1b   :  { %p483_p11 = scmp.ne.s32.totalorder %s584_s21, %s482_s16  ;;  %p488_p13 = scmp.lt.s32.totalorder %s482_s16, %s482_s16 }
  0x1d   :  { %p489_p0 = por %p488_p13, %p487_p12 }
  0x1f   :  { %p490_p1 = pnand %p489_p0, %p483_p11 }
  0x21   :  { %493 = shalt.err (!%p490_p1)
}
  0x22   :  { %24 = dma.hbm_to_vmem [thread:$0]  %s654_s0, 128, %s584_s21, [#allocation3], %s546_s30, %s546_s30, %s547_s6  }
  0x23   :  { %s548_s18 = smov [#allocation7]   ;;  %s494_s23 = scalar_lea.hbm %s657_s3, 1024 }
  0x24   :  { %s44_s19 = sshll.u32 %s548_s18, 4  ;;  %p495_p2 = scmp.ne.s32.totalorder %s657_s3, %s494_s23  ;;  %s45_s19 = int_to_ptr.vmem [resolvable:$true] %s44_s19 }
  0x25   :  { %p498_p3 = scmp.lt.u32.totalorder %s494_s23, %s657_s3 }
  0x27   :  { %p500_p4 = pnand %p498_p3, %p495_p2 }
  0x29   :  { %503 = shalt.err (!%p500_p4)
}
  0x2a   :  { %s504_s28 = scalar_lea.vmem %s45_s19, 1024  ;;  %p509_p6 = scmp.lt.s32.totalorder %s45_s19, %s45_s19 }
  0x2b   :  { %p505_p5 = scmp.ne.s32.totalorder %s45_s19, %s504_s28  ;;  %p510_p7 = scmp.lt.s32.totalorder %s504_s28, %s504_s28 }
  0x2d   :  { %p511_p8 = por %p510_p7, %p509_p6 }
  0x2f   :  { %p512_p9 = pnand %p511_p8, %p505_p5 }
  0x31   :  { %515 = shalt.err (!%p512_p9)
}
  0x32   :  { %50 = dma.hbm_to_vmem [thread:$0]  %s657_s3, 1024, %s45_s19, [#allocation6], %s546_s30, %s546_s30, %s547_s6  }
  0x33   :  { %538 = dma.done.wait [#allocation3], 128  }
  0x34   :  { %539 = vsyncadd [#allocation3], 4294967168 }
  0x35   :  { %540 = dma.done.wait [#allocation6], 2048  }
  0x36   :  { %541 = vsyncadd [#allocation6], 4294965248  ;;  %v549_v0 = vmov 0.0   ;;  %vm550_vm0 = vmmov 0   ;;  %v425_v1 = vld [vmem:[#allocation5] sm:$0xff]   ;;  %v426_v2 = vld [vmem:[#allocation5 + $0x8] sm:$0xff]  }
  0x37   :  { %375 = vmatprep.subr.bf16.mxu0 %v549_v0  ;;  %391 = vmatprep.mubr.msk.bf16.mxu0 %vm550_vm0, %v549_v0  ;;  %v427_v3 = vld [vmem:[#allocation5 + $0x10] sm:$0xff]   ;;  %v434_v4 = vld [vmem:[#allocation7] sm:$0xff]   ;;  %v428_v5 = vld [vmem:[#allocation5 + $0x18] sm:$0xff]  }
  0x38   :  { %395 = vmatprep.subr.bf16.mxu1 %v549_v0  ;;  %411 = vmatprep.mubr.msk.bf16.mxu1 %vm550_vm0, %v549_v0  ;;  %v435_v6 = vld [vmem:[#allocation7 + $0x8] sm:$0xff]   ;;  %v429_v7 = vld [vmem:[#allocation5 + $0x20] sm:$0xff]   ;;  %v436_v8 = vld [vmem:[#allocation7 + $0x10] sm:$0xff]  }
  0x39   :  { %376 = vmatpush3.bf16.msra.mxu0 %v425_v1  ;;  %396 = vmatpush3.bf16.msra.mxu1 %v434_v4  ;;  %v430_v9 = vld [vmem:[#allocation5 + $0x28] sm:$0xff]   ;;  %v437_v10 = vld [vmem:[#allocation7 + $0x18] sm:$0xff]   ;;  %v431_v11 = vld [vmem:[#allocation5 + $0x30] sm:$0xff]  }
  0x3a   :  { %377 = vmatprep.subr.bf16.mxu0 %v549_v0  ;;  %397 = vmatprep.subr.bf16.mxu1 %v549_v0  ;;  %v438_v12 = vld [vmem:[#allocation7 + $0x20] sm:$0xff]   ;;  %v432_v13 = vld [vmem:[#allocation5 + $0x38] sm:$0xff]   ;;  %v439_v14 = vld [vmem:[#allocation7 + $0x28] sm:$0xff]  }
  0x3b   :  { %v433_v15 = vld [vmem:[#allocation2] sm:$0xff]   ;;  %v440_v16 = vld [vmem:[#allocation7 + $0x30] sm:$0xff]  }
  0x3c   :  { %v441_v17 = vld [vmem:[#allocation7 + $0x38] sm:$0xff]  }
  0x3d   :  { %378 = vmatpush3.bf16.msra.mxu0 %v426_v2  ;;  %398 = vmatpush3.bf16.msra.mxu1 %v435_v6  ;;  %v338_v18 = vld [vmem:[%s656_s2] ss:$0 sm:$0xff]  ;;  %s551_s2 = smov [#allocation8]  }
  0x3e   :  { %379 = vmatprep.subr.bf16.mxu0 %v549_v0  ;;  %399 = vmatprep.subr.bf16.mxu1 %v549_v0  ;;  %v348_v28 = vld [vmem:[%s658_s4] ss:$0 sm:$0xff]  ;;  %s325_s4 = sshll.u32 %s551_s2, 4  ;;  %s326_s4 = int_to_ptr.vmem [resolvable:$true] %s325_s4 }
  0x3f   :  { %s516_s7 = scalar_lea.vmem %s326_s4, 256  ;;  %p521_p11 = scmp.lt.s32.totalorder %s326_s4, %s326_s4 }
  0x40   :  { %p517_p10 = scmp.ne.s32.totalorder %s326_s4, %s516_s7  ;;  %p522_p12 = scmp.lt.s32.totalorder %s516_s7, %s516_s7 }
  0x41   :  { %380 = vmatpush3.bf16.msra.mxu0 %v427_v3  ;;  %400 = vmatpush3.bf16.msra.mxu1 %v436_v8 }
  0x42   :  { %381 = vmatprep.subr.bf16.mxu0 %v549_v0  ;;  %401 = vmatprep.subr.bf16.mxu1 %v549_v0  ;;  %p523_p13 = por %p522_p12, %p521_p11 }
  0x44   :  { %p524_p0 = pnand %p523_p13, %p517_p10 }
  0x45   :  { %382 = vmatpush3.bf16.msra.mxu0 %v428_v5  ;;  %402 = vmatpush3.bf16.msra.mxu1 %v437_v10 }
  0x46   :  { %383 = vmatprep.subr.bf16.mxu0 %v549_v0  ;;  %403 = vmatprep.subr.bf16.mxu1 %v549_v0 }
  0x49   :  { %384 = vmatpush3.bf16.msra.mxu0 %v429_v7  ;;  %404 = vmatpush3.bf16.msra.mxu1 %v438_v12 }
  0x4a   :  { %385 = vmatprep.subr.bf16.mxu0 %v549_v0  ;;  %405 = vmatprep.subr.bf16.mxu1 %v549_v0 }
  0x4d   :  { %386 = vmatpush3.bf16.msra.mxu0 %v430_v9  ;;  %406 = vmatpush3.bf16.msra.mxu1 %v439_v14 }
  0x4e   :  { %387 = vmatprep.subr.bf16.mxu0 %v549_v0  ;;  %407 = vmatprep.subr.bf16.mxu1 %v549_v0 }
  0x51   :  { %388 = vmatpush3.bf16.msra.mxu0 %v431_v11  ;;  %408 = vmatpush3.bf16.msra.mxu1 %v440_v16 }
  0x52   :  { %389 = vmatprep.subr.bf16.mxu0 %v549_v0  ;;  %409 = vmatprep.subr.bf16.mxu1 %v549_v0 }
  0x55   :  { %390 = vmatpush3.bf16.msra.mxu0 %v432_v13  ;;  %410 = vmatpush3.bf16.msra.mxu1 %v441_v17 }
  0x58   :  { %392 = vmatmul.mubr.bf16.vlgmr.msra.gmra.mrb[0].mxu0 %v433_v15 }
 0x12b   :  { %v176_v19 = vpop.f32.mrb[0].mxu0 }
 0x12c   :  { %v177_v20 = vadd.f32 %v338_v18, %v176_v19  ;;  %v393_v21 = vpop.f32.mrb[1].mxu0 }
 0x12d   :  { %v179_v22 = vpop.f32.mrb[2].mxu0 }
 0x12e   :  { %v180_v23 = vadd.f32 %v338_v18, %v179_v22  ;;  %v394_v24 = vpop.f32.mrb[3].mxu0  ;;  %v183_v25 = vmax.f32 %v177_v20, 0.0 }
 0x130   :  { %v184_v26 = vmax.f32 %v180_v23, 0.0 }
 0x132   :  { %v185_v27 = vpack.c.bf16 %v184_v26, %v183_v25 }
 0x134   :  { %412 = vmatmul.mubr.bf16.vlgmr.msra.gmra.mrb[0].mxu1 %v185_v27 }
 0x207   :  { %v291_v29 = vpop.f32.mrb[0].mxu1 }
 0x208   :  { %v292_v30 = vadd.f32 %v348_v28, %v291_v29  ;;  %v413_v31 = vpop.f32.mrb[1].mxu1 }
 0x209   :  { %v294_v32 = vpop.f32.mrb[2].mxu1 }
 0x20a   :  { %298 = vmax.xlane.f32.xlu0 %v292_v30  ;;  %v414_v33 = vpop.f32.mrb[3].mxu1  ;;  %v295_v34 = vadd.f32 %v348_v28, %v294_v32 }
 0x20e   :  { %300 = vmax.xlane.f32.xlu0 %v295_v34 }
 0x297   :  { %v299_v35 = vpop.xlane.xlu0 %298 }
 0x298   :  { %v302_v36 = vsub.f32 %v292_v30, %v299_v35 }
 0x29a   :  { %v304_v37 = vmul.f32 1.442695, %v302_v36 }
 0x29b   :  { %v301_v38 = vpop.xlane.xlu0 %300 }
 0x29c   :  { %v303_v39 = vsub.f32 %v295_v34, %v301_v38  ;;  %442 = vpow2.f32 %v304_v37 }
 0x29e   :  { %v306_v40 = vmul.f32 1.442695, %v303_v39 }
 0x2a0   :  { %444 = vpow2.f32 %v306_v40 }
 0x2a6   :  { %v443_v41 = vpop.eup %442 }
 0x2a7   :  { %308 = vadd.xlane.f32.xlu1 %v443_v41 }
 0x2aa   :  { %v445_v42 = vpop.eup %444 }
 0x2ab   :  { %310 = vadd.xlane.f32.xlu1 %v445_v42 }
 0x334   :  { %v309_v43 = vpop.xlane.xlu1 %308 }
 0x335   :  { %446 = vlog2.f32 %v309_v43 }
 0x338   :  { %v311_v44 = vpop.xlane.xlu1 %310 }
 0x339   :  { %448 = vlog2.f32 %v311_v44 }
 0x33f   :  { %v447_v45 = vpop.eup %446 }
 0x340   :  { %v313_v46 = vmul.f32 0.6931472, %v447_v45 }
 0x342   :  { %v316_v47 = vsub.f32 %v302_v36, %v313_v46 }
 0x343   :  { %v449_v48 = vpop.eup %448 }
 0x344   :  { %318 = vst [vmem:[#allocation8] sm:$0xff] %v316_v47  ;;  %v315_v49 = vmul.f32 0.6931472, %v449_v48 }
 0x346   :  { %v317_v50 = vsub.f32 %v303_v39, %v315_v49 }
 0x348   :  { %319 = vst [vmem:[#allocation8 + $0x8] sm:$0xff] %v317_v50 }
 0x349   :  { %527 = shalt.err (!%p524_p0)
}
 0x34a   :  { %s528_s10 = scalar_lea.hbm %s659_s5, 256 }
 0x34b   :  { %p529_p1 = scmp.ne.s32.totalorder %s659_s5, %s528_s10  ;;  %p532_p2 = scmp.lt.u32.totalorder %s528_s10, %s659_s5 }
 0x34d   :  { %p534_p3 = pnand %p532_p2, %p529_p1 }
 0x34f   :  { %537 = shalt.err (!%p534_p3)
}
 0x350   :  { %s552_s15 = smov 128   ;;  %s553_s16 = smov 8  }
 0x351   :  { %331 = dma.vmem_to_hbm [thread:$0]  %s326_s4, 256, %s659_s5, [#allocation4], %s552_s15, %s552_s15, %s553_s16  }
 0x352   :  { %542 = dma.done.wait [#allocation4], 256  }
 0x353   :  { %543 = vsyncadd [#allocation4], 4294967040 }
 0x354   :  { %335 = vsyncpa [#allocation3], 1 }
 0x355   :  { %336 = vsyncpa [#allocation6], 1 }
 0x356   :  { %337 = vsyncpa [#allocation4], 1 }

</bundles_post_ra>
